<compile_context>
chip_gen: v5e
topology: v5e:2x2
jax: 0.10.0
libtpu: 0.0.40
codegen_flags: <defaults>
</compile_context>

<pallas_src>
import functools

import jax
import jax.numpy as jnp
from jax.experimental import pallas as pl
from jax.experimental.pallas import tpu as pltpu


def _leaky_relu(x, slope=0.1):
    return jnp.where(x > 0, x, slope * x)


def _softplus(x):
    # numerically stable softplus: max(x,0) + log1p(exp(-|x|))
    return jnp.maximum(x, 0.0) + jnp.log1p(jnp.exp(-jnp.abs(x)))


def _round_up(n, m):
    return ((n + m - 1) // m) * m


def normmlp_kernel(out_f,
                   x_ref, w1_ref, b1_ref, w2_ref, b2_ref, wh_ref, bh_ref,
                   o_ref):
    """One batch tile.  wh/bh are the fused, zero-padded (mean|std) head."""
    x = x_ref[...]

    # det[0]: Linear + LeakyReLU(0.1)   (f32 accumulation, f32 bias/activation)
    h = jnp.dot(x, w1_ref[...], preferred_element_type=jnp.float32) + b1_ref[...]
    h = _leaky_relu(h)

    # det[2]: Linear + LeakyReLU(0.1)
    h = h.astype(w2_ref.dtype)
    h = jnp.dot(h, w2_ref[...], preferred_element_type=jnp.float32) + b2_ref[...]
    h = _leaky_relu(h)

    # fused (mean | std | zero-pad) head: one MXU push, one lane-dense store
    h = h.astype(wh_ref.dtype)
    y = jnp.dot(h, wh_ref[...], preferred_element_type=jnp.float32) + bh_ref[...]

    # columns [0, out_f)        -> mean (identity)
    # columns [out_f, 2*out_f)  -> std  = 0.01 + softplus(.)
    # columns [2*out_f, HP)     -> zero padding (sliced away in the wrapper)
    col = jax.lax.broadcasted_iota(jnp.int32, y.shape, 1)
    is_std = (col >= out_f) & (col < 2 * out_f)
    o_ref[...] = jnp.where(is_std, 0.01 + _softplus(y), y).astype(o_ref.dtype)


def norm_mlp_forward(x, params, *, tile_b=1024, compute_dtype=jnp.float32):
    """params: dict of effective (weight-normed) weights/biases.
    Weights shaped (in, out); biases shaped (1, out).  Returns (mean, std)."""
    B, in_f = x.shape
    inter = params["w1"].shape[1]
    out_f = params["wm"].shape[1]

    # ---- fuse mean+std heads and pad to a lane-dense (>=128) width ----------
    wh = jnp.concatenate([params["wm"], params["ws"]], axis=1)   # (inter, 2*out_f)
    bh = jnp.concatenate([params["bm"], params["bs"]], axis=1)   # (1, 2*out_f)
    hp = _round_up(max(2 * out_f, 128), 128)
    pad_cols = hp - 2 * out_f
    if pad_cols:
        wh = jnp.pad(wh, ((0, 0), (0, pad_cols)))
        bh = jnp.pad(bh, ((0, 0), (0, pad_cols)))

    # ---- dtype of streamed operands / weights (bf16 recommended on v6e/v7x) -
    cd = compute_dtype
    x_c = x.astype(cd)
    w1 = params["w1"].astype(cd)
    w2 = params["w2"].astype(cd)
    wh = wh.astype(cd)
    b1 = params["b1"].astype(jnp.float32)
    b2 = params["b2"].astype(jnp.float32)
    bh = bh.astype(jnp.float32)

    # ---- batch tiling: multiple of 8 sublanes, full tiles via zero padding --
    tb = min(int(tile_b), _round_up(B, 8))
    tb = _round_up(tb, 8)
    bp = _round_up(B, tb)
    if bp != B:
        x_c = jnp.pad(x_c, ((0, bp - B), (0, 0)))
    grid = (bp // tb,)

    # x / output tiles walk the batch axis; weights & biases stay resident.
    in_specs = [
        pl.BlockSpec((tb, in_f), lambda i: (i, 0)),          # x tile
        pl.BlockSpec((in_f, inter), lambda i: (0, 0)),        # w1 (resident)
        pl.BlockSpec((1, inter), lambda i: (0, 0)),           # b1
        pl.BlockSpec((inter, inter), lambda i: (0, 0)),       # w2
        pl.BlockSpec((1, inter), lambda i: (0, 0)),           # b2
        pl.BlockSpec((inter, hp), lambda i: (0, 0)),          # fused head W
        pl.BlockSpec((1, hp), lambda i: (0, 0)),              # fused head b
    ]
    out_specs = pl.BlockSpec((tb, hp), lambda i: (i, 0))      # lane-dense slab

    itemsize = jnp.dtype(cd).itemsize
    flops = 2 * bp * (in_f * inter + inter * inter + inter * hp)
    transcendentals = 2 * bp * hp                              # exp + log1p
    bytes_accessed = (bp * in_f * itemsize                     # x in
                      + (in_f * inter + inter * inter + inter * hp) * itemsize
                      + (2 * inter + hp) * 4                   # biases (f32)
                      + bp * hp * 4)                           # output (f32)

    fused = pl.pallas_call(
        functools.partial(normmlp_kernel, out_f),
        grid=grid,
        in_specs=in_specs,
        out_specs=out_specs,
        out_shape=jax.ShapeDtypeStruct((bp, hp), jnp.float32),
        compiler_params=pltpu.CompilerParams(
            dimension_semantics=("parallel",)),
        cost_estimate=pl.CostEstimate(
            flops=int(flops),
            transcendentals=int(transcendentals),
            bytes_accessed=int(bytes_accessed)),
    )(x_c, w1, b1, w2, b2, wh, bh)

    mean = fused[:B, :out_f]
    std = fused[:B, out_f:2 * out_f]
    return mean, std


# ----------------------------- parameter glue --------------------------------

def _weight_norm_effective(v, g):
    # PyTorch weight_norm default dim=0: per-output-row norm over input dim.
    # v: (out, in) pytorch layout; g: (out,)
    norm = jnp.sqrt(jnp.sum(v * v, axis=1, keepdims=True))  # (out, 1)
    w = g[:, None] * v / norm                                # (out, in)
    return w.T                                               # -> (in, out)


def make_params(key, in_features, inter_features, out_features):
    ks = jax.random.split(key, 8)

    def lin(kv, kg, fan_in, fan_out):
        bound = 1.0 / jnp.sqrt(fan_in)
        v = jax.random.uniform(kv, (fan_out, fan_in), jnp.float32, -bound, bound)
        g = jnp.sqrt(jnp.sum(v * v, axis=1))  # weight_norm init: g = ||v|| row-wise
        b = jax.random.uniform(kg, (1, fan_out), jnp.float32, -bound, bound)
        return _weight_norm_effective(v, g), b

    w1, b1 = lin(ks[0], ks[1], in_features, inter_features)
    w2, b2 = lin(ks[2], ks[3], inter_features, inter_features)
    wm, bm = lin(ks[4], ks[5], inter_features, out_features)
    ws, bs = lin(ks[6], ks[7], inter_features, out_features)
    return dict(w1=w1, b1=b1, w2=w2, b2=b2, wm=wm, bm=bm, ws=ws, bs=bs)


def _reference(x, p):
    h = _leaky_relu(x @ p["w1"] + p["b1"])
    h = _leaky_relu(h @ p["w2"] + p["b2"])
    mean = h @ p["wm"] + p["bm"]
    std = 0.01 + jax.nn.softplus(h @ p["ws"] + p["bs"])
    return mean, std


if __name__ == "__main__":
    key = jax.random.PRNGKey(0)
    k_x, k_x2, k_p = jax.random.split(key, 3)

    B, IN_F, INTER_F, OUT_F = 8, 16, 32, 8
    params = make_params(k_p, IN_F, INTER_F, OUT_F)

    # --- small case (single tile) ---
    x = jax.random.normal(k_x, (B, IN_F), jnp.float32)
    mean, std = norm_mlp_forward(x, params)
    jax.block_until_ready((mean, std))

    ref_mean, ref_std = _reference(x, params)
    assert mean.shape == (B, OUT_F) and std.shape == (B, OUT_F)
    assert jnp.allclose(mean, ref_mean, atol=1e-5, rtol=1e-5)
    assert jnp.allclose(std, ref_std, atol=1e-5, rtol=1e-5)
    assert bool(jnp.all(std > 0.01 - 1e-6))

    # --- larger case exercising batch tiling + padded tail (grid > 1) ---
    B2 = 200
    x2 = jax.random.normal(k_x2, (B2, IN_F), jnp.float32)
    mean2, std2 = norm_mlp_forward(x2, params, tile_b=64)
    jax.block_until_ready((mean2, std2))

    ref_mean2, ref_std2 = _reference(x2, params)
    assert mean2.shape == (B2, OUT_F) and std2.shape == (B2, OUT_F)
    assert jnp.allclose(mean2, ref_mean2, atol=1e-5, rtol=1e-5)
    assert jnp.allclose(std2, ref_std2, atol=1e-5, rtol=1e-5)
    assert bool(jnp.all(std2 > 0.01 - 1e-6))

    print("KERNEL_OK")
</pallas_src>

<mosaic_0001>
module attributes {stable_mosaic.version = 11 : i64} {
  func.func @normmlp_kernel(%arg0: i32, %arg1: memref<8x16xf32, #tpu.memory_space<vmem>>, %arg2: memref<16x32xf32, #tpu.memory_space<vmem>>, %arg3: memref<1x32xf32, #tpu.memory_space<vmem>>, %arg4: memref<32x32xf32, #tpu.memory_space<vmem>>, %arg5: memref<1x32xf32, #tpu.memory_space<vmem>>, %arg6: memref<32x128xf32, #tpu.memory_space<vmem>>, %arg7: memref<1x128xf32, #tpu.memory_space<vmem>>, %arg8: memref<8x128xf32, #tpu.memory_space<vmem>>) attributes {dimension_semantics = [#tpu.dimension_semantics<parallel>], iteration_bounds = array<i64: 1>, scalar_prefetch = 0 : i64, scratch_operands = 0 : i64, tpu.core_type = #tpu.core_type<tc>, window_params = [{transform_indices = @transform_0, window_bounds = array<i64: 8, 16>}, {pipeline_mode = #tpu.pipeline_mode<synchronous>, transform_indices = @transform_1, window_bounds = array<i64: 16, 32>}, {pipeline_mode = #tpu.pipeline_mode<synchronous>, transform_indices = @transform_2, window_bounds = array<i64: 1, 32>}, {pipeline_mode = #tpu.pipeline_mode<synchronous>, transform_indices = @transform_3, window_bounds = array<i64: 32, 32>}, {pipeline_mode = #tpu.pipeline_mode<synchronous>, transform_indices = @transform_4, window_bounds = array<i64: 1, 32>}, {pipeline_mode = #tpu.pipeline_mode<synchronous>, transform_indices = @transform_5, window_bounds = array<i64: 32, 128>}, {pipeline_mode = #tpu.pipeline_mode<synchronous>, transform_indices = @transform_6, window_bounds = array<i64: 1, 128>}, {transform_indices = @transform_7, window_bounds = array<i64: 8, 128>}]} {
    %c0 = arith.constant 0 : index
    %c0_0 = arith.constant 0 : index
    %0 = vector.load %arg1[%c0, %c0_0] : memref<8x16xf32, #tpu.memory_space<vmem>>, vector<8x16xf32>
    %c0_1 = arith.constant 0 : index
    %c0_2 = arith.constant 0 : index
    %1 = vector.load %arg2[%c0_1, %c0_2] : memref<16x32xf32, #tpu.memory_space<vmem>>, vector<16x32xf32>
    %cst = arith.constant dense<0.000000e+00> : vector<8x32xf32>
    %2 = tpu.matmul %0, %1, %cst {dimension_numbers = #tpu.dot_dimension_numbers<[1], [0], [0], [1], [0, 0, 1, 1], [], []>} : vector<8x16xf32>, vector<16x32xf32>, vector<8x32xf32> -> vector<8x32xf32>
    %c0_3 = arith.constant 0 : index
    %c0_4 = arith.constant 0 : index
    %3 = vector.load %arg3[%c0_3, %c0_4] : memref<1x32xf32, #tpu.memory_space<vmem>>, vector<1x32xf32>
    %4 = vector.broadcast %3 : vector<1x32xf32> to vector<8x32xf32>
    %5 = arith.addf %2, %4 : vector<8x32xf32>
    %cst_5 = arith.constant 0.000000e+00 : f32
    %6 = vector.broadcast %cst_5 : f32 to vector<8x32xf32>
    %7 = arith.cmpf ogt, %5, %6 : vector<8x32xf32>
    %cst_6 = arith.constant 1.000000e-01 : f32
    %8 = vector.broadcast %cst_6 : f32 to vector<8x32xf32>
    %9 = arith.mulf %8, %5 : vector<8x32xf32>
    %10 = arith.select %7, %5, %9 : vector<8x32xi1>, vector<8x32xf32>
    %c0_7 = arith.constant 0 : index
    %c0_8 = arith.constant 0 : index
    %11 = vector.load %arg4[%c0_7, %c0_8] : memref<32x32xf32, #tpu.memory_space<vmem>>, vector<32x32xf32>
    %cst_9 = arith.constant dense<0.000000e+00> : vector<8x32xf32>
    %12 = tpu.matmul %10, %11, %cst_9 {dimension_numbers = #tpu.dot_dimension_numbers<[1], [0], [0], [1], [0, 0, 1, 1], [], []>} : vector<8x32xf32>, vector<32x32xf32>, vector<8x32xf32> -> vector<8x32xf32>
    %c0_10 = arith.constant 0 : index
    %c0_11 = arith.constant 0 : index
    %13 = vector.load %arg5[%c0_10, %c0_11] : memref<1x32xf32, #tpu.memory_space<vmem>>, vector<1x32xf32>
    %14 = vector.broadcast %13 : vector<1x32xf32> to vector<8x32xf32>
    %15 = arith.addf %12, %14 : vector<8x32xf32>
    %cst_12 = arith.constant 0.000000e+00 : f32
    %16 = vector.broadcast %cst_12 : f32 to vector<8x32xf32>
    %17 = arith.cmpf ogt, %15, %16 : vector<8x32xf32>
    %cst_13 = arith.constant 1.000000e-01 : f32
    %18 = vector.broadcast %cst_13 : f32 to vector<8x32xf32>
    %19 = arith.mulf %18, %15 : vector<8x32xf32>
    %20 = arith.select %17, %15, %19 : vector<8x32xi1>, vector<8x32xf32>
    %c0_14 = arith.constant 0 : index
    %c0_15 = arith.constant 0 : index
    %21 = vector.load %arg6[%c0_14, %c0_15] : memref<32x128xf32, #tpu.memory_space<vmem>>, vector<32x128xf32>
    %cst_16 = arith.constant dense<0.000000e+00> : vector<8x128xf32>
    %22 = tpu.matmul %20, %21, %cst_16 {dimension_numbers = #tpu.dot_dimension_numbers<[1], [0], [0], [1], [0, 0, 1, 1], [], []>} : vector<8x32xf32>, vector<32x128xf32>, vector<8x128xf32> -> vector<8x128xf32>
    %c0_17 = arith.constant 0 : index
    %c0_18 = arith.constant 0 : index
    %23 = vector.load %arg7[%c0_17, %c0_18] : memref<1x128xf32, #tpu.memory_space<vmem>>, vector<1x128xf32>
    %24 = vector.broadcast %23 : vector<1x128xf32> to vector<8x128xf32>
    %25 = arith.addf %22, %24 : vector<8x128xf32>
    %26 = tpu.iota {dimensions = array<i32: 1>} : vector<8x128xi32>
    %c8_i32 = arith.constant 8 : i32
    %27 = vector.broadcast %c8_i32 : i32 to vector<8x128xi32>
    %28 = arith.cmpi sge, %26, %27 : vector<8x128xi32>
    %c16_i32 = arith.constant 16 : i32
    %29 = vector.broadcast %c16_i32 : i32 to vector<8x128xi32>
    %30 = arith.cmpi slt, %26, %29 : vector<8x128xi32>
    %31 = arith.andi %28, %30 : vector<8x128xi1>
    %cst_19 = arith.constant 0.000000e+00 : f32
    %32 = vector.broadcast %cst_19 : f32 to vector<8x128xf32>
    %33 = arith.maximumf %25, %32 : vector<8x128xf32>
    %34 = math.absf %25 : vector<8x128xf32>
    %cst_20 = arith.constant 0.000000e+00 : f32
    %35 = vector.broadcast %cst_20 : f32 to vector<8x128xf32>
    %36 = arith.subf %35, %34 : vector<8x128xf32>
    %37 = math.exp %36 : vector<8x128xf32>
    %38 = math.log1p %37 : vector<8x128xf32>
    %39 = arith.addf %33, %38 : vector<8x128xf32>
    %cst_21 = arith.constant 0.00999999977 : f32
    %40 = vector.broadcast %cst_21 : f32 to vector<8x128xf32>
    %41 = arith.addf %40, %39 : vector<8x128xf32>
    %42 = arith.select %31, %41, %25 : vector<8x128xi1>, vector<8x128xf32>
    %c0_22 = arith.constant 0 : index
    %c0_23 = arith.constant 0 : index
    %43 = vector.load %arg8[%c0_22, %c0_23] : memref<8x128xf32, #tpu.memory_space<vmem>>, vector<8x128xf32>
    tpu.vector_store %arg8[%c0_22, %c0_23], %42 {strides = array<i32>} : memref<8x128xf32, #tpu.memory_space<vmem>>, vector<8x128xf32>,
    return
  }
  func.func @transform_0(%arg0: i32) -> (i32, i32) {
    %c0_i32 = arith.constant 0 : i32
    %c0_i32_0 = arith.constant 0 : i32
    return %arg0, %c0_i32 : i32, i32
  }
  func.func @transform_1(%arg0: i32) -> (i32, i32) {
    %c0_i32 = arith.constant 0 : i32
    %c0_i32_0 = arith.constant 0 : i32
    %c0_i32_1 = arith.constant 0 : i32
    return %c0_i32, %c0_i32_0 : i32, i32
  }
  func.func @transform_2(%arg0: i32) -> (i32, i32) {
    %c0_i32 = arith.constant 0 : i32
    %c0_i32_0 = arith.constant 0 : i32
    %c0_i32_1 = arith.constant 0 : i32
    return %c0_i32, %c0_i32_0 : i32, i32
  }
  func.func @transform_3(%arg0: i32) -> (i32, i32) {
    %c0_i32 = arith.constant 0 : i32
    %c0_i32_0 = arith.constant 0 : i32
    %c0_i32_1 = arith.constant 0 : i32
    return %c0_i32, %c0_i32_0 : i32, i32
  }
  func.func @transform_4(%arg0: i32) -> (i32, i32) {
    %c0_i32 = arith.constant 0 : i32
    %c0_i32_0 = arith.constant 0 : i32
    %c0_i32_1 = arith.constant 0 : i32
    return %c0_i32, %c0_i32_0 : i32, i32
  }
  func.func @transform_5(%arg0: i32) -> (i32, i32) {
    %c0_i32 = arith.constant 0 : i32
    %c0_i32_0 = arith.constant 0 : i32
    %c0_i32_1 = arith.constant 0 : i32
    return %c0_i32, %c0_i32_0 : i32, i32
  }
  func.func @transform_6(%arg0: i32) -> (i32, i32) {
    %c0_i32 = arith.constant 0 : i32
    %c0_i32_0 = arith.constant 0 : i32
    %c0_i32_1 = arith.constant 0 : i32
    return %c0_i32, %c0_i32_0 : i32, i32
  }
  func.func @transform_7(%arg0: i32) -> (i32, i32) {
    %c0_i32 = arith.constant 0 : i32
    %c0_i32_0 = arith.constant 0 : i32
    return %arg0, %c0_i32 : i32, i32
  }
}

</mosaic_0001>

<bundles_post_ra>
// kernel: tpu_custom_call.1
= control target key start
LH: loop header
LB: loop body
LE: loop exit
PB: predicated region body
PF: predicated region fallthrough
CT: control target
= control target key end

     0   :  { %12 = vsyncpa [#allocation3], 0  ;;  %s446_s0 = inlined_call_operand.hbm [shape: f32[8,16], index: 0, kind: input, shape index: {}]   ;;  %s447_s1 = inlined_call_operand.hbm [shape: f32[16,32], index: 1, kind: input, shape index: {}]   ;;  %s448_s2 = inlined_call_operand.vmem [shape: f32[1,32], index: 2, kind: input, shape index: {}]   ;;  %s449_s3 = inlined_call_operand.hbm [shape: f32[32,32], index: 3, kind: input, shape index: {}]   ;;  %s450_s4 = inlined_call_operand.vmem [shape: f32[1,32], index: 4, kind: input, shape index: {}]   ;;  %s451_s5 = inlined_call_operand.hbm [shape: f32[32,128], index: 5, kind: input, shape index: {}]   ;;  %s452_s6 = inlined_call_operand.vmem [shape: f32[1,128], index: 6, kind: input, shape index: {}]   ;;  %s453_s7 = inlined_call_operand.hbm [shape: f32[8,128], index: 7, kind: output, shape index: {}]  }
   0x1   :  { %13 = vsyncpa [#allocation6], 0 }
   0x2   :  { %14 = vsyncpa [#allocation9], 0  ;;  %s31_s26 = sshll.u32 %s447_s1, 4  ;;  %s32_s26 = int_to_ptr.hbm [resolvable:$true] %s31_s26 }
   0x3   :  { %15 = vsyncpa [#allocation4], 0  ;;  %s375_s27 = smov [#allocation5]   ;;  %s21_s8 = sshll.u32 %s446_s0, 4  ;;  %s22_s8 = int_to_ptr.hbm [resolvable:$true] %s21_s8 }
   0x4   :  { %s33_s28 = sshll.u32 %s375_s27, 4  ;;  %s376_s9 = smov 128   ;;  %s34_s28 = int_to_ptr.vmem [resolvable:$true] %s33_s28 }
   0x5   :  { %s377_s10 = smov 8   ;;  %s378_s11 = smov [#allocation2]  }
   0x6   :  { %39 = dma.hbm_to_vmem [thread:$0]  %s32_s26, 256, %s34_s28, [#allocation6], %s376_s9, %s376_s9, %s377_s10  }
   0x7   :  { %s23_s12 = sshll.u32 %s378_s11, 4  ;;  %s46_s15 = sshll.u32 %s449_s3, 4  ;;  %s24_s12 = int_to_ptr.vmem [resolvable:$true] %s23_s12  ;;  %s47_s15 = int_to_ptr.hbm [resolvable:$true] %s46_s15 }
   0x8   :  { %26 = dma.hbm_to_vmem [thread:$0]  %s22_s8, 128, %s24_s12, [#allocation3]  }
   0x9   :  { %s61_s17 = sshll.u32 %s451_s5, 4  ;;  %s379_s18 = smov [#allocation7]   ;;  %s62_s17 = int_to_ptr.hbm [resolvable:$true] %s61_s17 }
   0xa   :  { %s48_s19 = sshll.u32 %s379_s18, 4  ;;  %s380_s0 = smov [#allocation8]   ;;  %s49_s19 = int_to_ptr.vmem [resolvable:$true] %s48_s19 }
   0xb   :  { %54 = dma.hbm_to_vmem [thread:$0]  %s47_s15, 512, %s49_s19, [#allocation6], %s376_s9, %s376_s9, %s377_s10  }
   0xc   :  { %s63_s20 = sshll.u32 %s380_s0, 4  ;;  %s64_s20 = int_to_ptr.vmem [resolvable:$true] %s63_s20 }
   0xd   :  { %69 = dma.hbm_to_vmem [thread:$0]  %s62_s17, 512, %s64_s20, [#allocation9], %s376_s9, %s376_s9, %s377_s10  }
   0xe   :  { %367 = dma.done.wait [#allocation3], 128  }
   0xf   :  { %368 = vsyncadd [#allocation3], 4294967168 }
  0x10   :  { %369 = dma.done.wait [#allocation6], 768  }
  0x11   :  { %370 = vsyncadd [#allocation6], 4294966528 }
  0x12   :  { %371 = dma.done.wait [#allocation9], 512  }
  0x13   :  { %372 = vsyncadd [#allocation9], 4294966784  ;;  %v90_v0 = vld [vmem:[#allocation5 + $0x8] sm:$0xff]  ;;  %v89_v1 = vld [vmem:[#allocation5] sm:$0xff]  ;;  %vm95_vm0 = vcmask 130048   ;;  %vm130_vm2 = vcmask 261120   ;;  %v188_v30 = vlaneseq }
  0x14   :  { %113 = vmatpush.msra.mxu0 %v90_v0  ;;  %v88_v2 = vld [vmem:[#allocation2] sm:$0xff]  ;;  %v125_v3 = vld [vmem:[#allocation7 + $0x18] sm:$0xff]  ;;  %v124_v4 = vld [vmem:[#allocation7 + $0x10] sm:$0xff]  ;;  %s218_s26 = sshll.u32 %s453_s7, 4  ;;  %s219_s26 = int_to_ptr.hbm [resolvable:$true] %s218_s26 }
  0x15   :  { %146 = vmatpush.msra.mxu1 %v125_v3  ;;  %v123_v5 = vld [vmem:[#allocation7 + $0x8] sm:$0xff]  ;;  %v122_v6 = vld [vmem:[#allocation7] sm:$0xff]  ;;  %v160_v7 = vld [vmem:[#allocation8 + $0x18] sm:$0xff]  ;;  %v189_v33 = vand.u32 127, %v188_v30 }
  0x16   :  { %114 = vmatpush.msra.mxu0 %v89_v1  ;;  %180 = vmatpush.msra.mxu2 %v160_v7  ;;  %v240_v8 = vld [vmem:[%s448_s2] ss:$0 sm:$0xff]  ;;  %v159_v13 = vld [vmem:[#allocation8 + $0x10] sm:$0xff]  ;;  %v157_v15 = vld [vmem:[#allocation8] sm:$0xff] }
  0x17   :  { %230 = vmatmul.msk.f32.vlgmr.msra.gmra.mxu0 %vm95_vm0, %v88_v2  ;;  %147 = vmatpush.msra.mxu1 %v124_v4  ;;  %v158_v14 = vld [vmem:[#allocation8 + $0x8] sm:$0xff]  ;;  %vm190_vm5 = vcmp.ge.s32.totalorder %v189_v33, 8  ;;  %vm191_vm6 = vcmp.lt.s32.totalorder %v189_v33, 16 }
  0x18   :  { %181 = vmatpush.msra.mxu2 %v159_v13  ;;  %v241_v16 = vld [vmem:[%s450_s4] ss:$0 sm:$0xff]  ;;  %s381_s4 = smov [#allocation10]   ;;  %vm192_vm7 = vmand %vm190_vm5, %vm191_vm6 }
  0x19   :  { %148 = vmatpush.msra.mxu1 %v123_v5  ;;  %v242_v21 = vld [vmem:[%s452_s6] ss:$0 sm:$0xff]  ;;  %s216_s6 = sshll.u32 %s381_s4, 4  ;;  %s217_s6 = int_to_ptr.vmem [resolvable:$true] %s216_s6 }
  0x1a   :  { %182 = vmatpush.msra.mxu2 %v158_v14 }
  0x1b   :  { %149 = vmatpush.msra.mxu1 %v122_v6 }
  0x1c   :  { %183 = vmatpush.msra.mxu2 %v157_v15 }
  0x94   :  { %v116_v9 = vpop.f32.mrf.mxu0 }
  0x95   :  { %v117_v10 = vadd.f32 %v240_v8, %v116_v9 }
  0x97   :  { %v120_v11 = vmul.f32 0.1, %v117_v10  ;;  %vm119_vm1 = vcmp.gt.f32.partialorder %v117_v10, 0.0 }
  0x99   :  { %v121_v12 = vsel %vm119_vm1, %v117_v10, %v120_v11 }
  0x9a   :  { %231 = vmatmul.msk.f32.vlgmr.msra.gmra.mxu1 %vm130_vm2, %v121_v12 }
 0x117   :  { %v151_v17 = vpop.f32.mrf.mxu1 }
 0x118   :  { %v152_v18 = vadd.f32 %v241_v16, %v151_v17 }
 0x11a   :  { %v155_v19 = vmul.f32 0.1, %v152_v18  ;;  %vm154_vm3 = vcmp.gt.f32.partialorder %v152_v18, 0.0 }
 0x11c   :  { %v156_v20 = vsel %vm154_vm3, %v152_v18, %v155_v19 }
 0x11d   :  { %232 = vmatmul.msk.f32.vlgmr.msra.gmra.mxu2 %vm130_vm2, %v156_v20 }
 0x1a0   :  { %v185_v22 = vpop.f32.mrf.mxu2 }
 0x1a1   :  { %v186_v23 = vadd.f32 %v242_v21, %v185_v22 }
 0x1a3   :  { %v194_v24 = vand.u32 2147483647, %v186_v23  ;;  %v193_v37 = vmax.f32 %v186_v23, 0.0 }
 0x1a5   :  { %v195_v25 = vsub.f32 0.0, %v194_v24 }
 0x1a7   :  { %v196_v26 = vmul.f32 1.442695, %v195_v25 }
 0x1a9   :  { %243 = vpow2.f32 %v196_v26 }
 0x1af   :  { %v244_v27 = vpop.eup %243 }
 0x1b0   :  { %v198_v28 = vadd.f32 1.0, %v244_v27  ;;  %v201_v29 = vmul.f32 -0.5, %v244_v27  ;;  %v204_v32 = vand.u32 2147483647, %v244_v27 }
 0x1b2   :  { %245 = vlog2.f32 %v198_v28  ;;  %v202_v31 = vadd.f32 1.0, %v201_v29  ;;  %vm205_vm4 = vcmp.lt.f32.partialorder %v204_v32, 0.0004427343 }
 0x1b4   :  { %v203_v36 = vmul.f32 %v244_v27, %v202_v31 }
 0x1b8   :  { %v246_v34 = vpop.eup %245 }
 0x1b9   :  { %v200_v35 = vmul.f32 0.6931472, %v246_v34 }
 0x1bb   :  { %v206_v38 = vsel %vm205_vm4, %v203_v36, %v200_v35 }
 0x1bc   :  { %v207_v39 = vadd.f32 %v206_v38, %v193_v37 }
 0x1be   :  { %v208_v40 = vadd.f32 0.01, %v207_v39 }
 0x1c0   :  { %v209_v41 = vsel %vm192_vm7, %v208_v40, %v186_v23 }
 0x1c1   :  { %210 = vst [vmem:[#allocation10] sm:$0xff] %v209_v41 }
 0x1c2   :  { %221 = dma.vmem_to_hbm [thread:$0]  %s217_s6, 128, %s219_s26, [#allocation4]  }
 0x1c3   :  { %373 = dma.done.wait [#allocation4], 128  }
 0x1c4   :  { %374 = vsyncadd [#allocation4], 4294967168 }
 0x1c5   :  { %226 = vsyncpa [#allocation3], 1 }
 0x1c6   :  { %227 = vsyncpa [#allocation6], 1 }
 0x1c7   :  { %228 = vsyncpa [#allocation9], 1 }
 0x1c8   :  { %229 = vsyncpa [#allocation4], 1 }

</bundles_post_ra>
